<compile_context>
chip_gen: v6e
topology: v6e:2x2x1
jax: 0.10.0
libtpu: 0.0.40
codegen_flags: <defaults>
</compile_context>

<pallas_src>
import numpy as np
import jax
import jax.numpy as jnp
from jax.experimental import pallas as pl
from jax.experimental.pallas import tpu as pltpu


_FILTERS = {
    1: [1.0],
    2: [1.0, 1.0],
    3: [1.0, 2.0, 1.0],
    4: [1.0, 3.0, 3.0, 1.0],
    5: [1.0, 4.0, 6.0, 4.0, 1.0],
    6: [1.0, 5.0, 10.0, 10.0, 5.0, 1.0],
    7: [1.0, 6.0, 15.0, 20.0, 15.0, 6.0, 1.0],
}

# Kronecker path is used while kron(Vh, Vw) (bf16) stays below this size
# (covers feature maps up to 32x32); larger spatial uses the separable path.
_KRON_KMAT_LIMIT = 8 * 1024 * 1024


# ---------------------------------------------------------------------------
# Constant per-axis matrices (fold pad + conv_transpose1d + crop of one axis).
# ---------------------------------------------------------------------------
def _pad1_matrix(n, pad_type):
    """Matrix form of the pad-by-1 (one axis): (n+2, n)."""
    P = np.zeros((n + 2, n), np.float64)
    P[1:n + 1, :] = np.eye(n)
    if pad_type in ("repl", "replicate"):
        P[0, 0] = 1.0
        P[n + 1, n - 1] = 1.0
    elif pad_type in ("refl", "reflect"):
        P[0, 1] = 1.0
        P[n + 1, n - 2] = 1.0
    elif pad_type == "zero":
        pass
    else:
        raise ValueError(f"unknown pad type {pad_type!r}")
    return P


def _upsample_1d_matrix(n, pad_type="repl", filt_size=4, stride=2):
    """(n_out, n) matrix applying the 1-D factor of the Upsample op."""
    a = np.asarray(_FILTERS[filt_size], np.float64)
    w1d = a * stride / a.sum()            # 1-D factor of (filt / filt.sum()) * stride**2
    pad_size = (filt_size - 1) // 2
    p = 1 + pad_size
    P = _pad1_matrix(n, pad_type)         # (L, n), L = n + 2
    L = n + 2
    out_len = (L - 1) * stride - 2 * p + filt_size
    T = np.zeros((out_len, L), np.float64)
    for i in range(L):                    # conv_transpose: o = i*stride - p + k
        for k in range(filt_size):
            o = i * stride - p + k
            if 0 <= o < out_len:
                T[o, i] += w1d[k]
    M = T @ P
    M = M[1:]                             # [..., 1:, 1:]
    if filt_size % 2 == 0:
        M = M[:-1]                        # [..., :-1, :-1]
    return np.ascontiguousarray(M, np.float32)


# ---------------------------------------------------------------------------
# Tiling helpers (generation-aware VMEM budget, >=2 parallel grid steps).
# ---------------------------------------------------------------------------
def _round_up(v, m):
    return -(-v // m) * m


def _vmem_budget_bytes():
    cap = 64 * 1024 * 1024                       # conservative default (v7x physical)
    try:
        info = pltpu.get_tpu_info()
        cap = int(getattr(info, "vmem_capacity_bytes", cap))
    except Exception:
        pass
    # 3/4 of physical for the pipeline, capped well below v5e/v6e's 128 MiB.
    return int(min(cap * 3 // 4, 96 * 1024 * 1024))


def _pick_plane_tile(n_planes, per_plane_bytes, fixed_bytes, budget_bytes):
    """Largest plane tile (multiple of 8) that fits the VMEM budget; keeps the grid
    at >= 2 parallel steps when there is enough work (v7x has 2 TensorCores)."""
    avail = max(budget_bytes - fixed_bytes, per_plane_bytes)
    cap = max(8, (avail // per_plane_bytes) // 8 * 8)
    cap = min(cap, 2048)
    if n_planes <= cap:
        if n_planes >= 16:
            return min(n_planes, _round_up(pl.cdiv(n_planes, 2), 8))
        return n_planes
    return cap


# ---------------------------------------------------------------------------
# Kernels.
# ---------------------------------------------------------------------------
def _kron_kernel(x_ref, k_ref, o_ref):
    # x_ref: (tn, H*W) f32   k_ref: (H*W, Ho*Wo) bf16   o_ref: (tn, Ho*Wo) f32
    x = x_ref[...].astype(jnp.bfloat16)
    o_ref[...] = jnp.dot(x, k_ref[...],
                         preferred_element_type=jnp.float32).astype(o_ref.dtype)


def _separable_kernel(x_ref, vh_ref, vwt_ref, o_ref):
    # x_ref: (tc, H, W) f32   vh_ref: (Ho, H) bf16   vwt_ref: (W, Wo) bf16
    # o_ref: (tc, Ho, Wo) f32
    tc, _, w = x_ref.shape
    ho, h = vh_ref.shape
    wo = vwt_ref.shape[1]
    x = x_ref[...].astype(jnp.bfloat16)
    # Stage 1 (H-side): channel-batched matmul  t[c] = Vh @ x[c]   -> (tc, Ho, W)
    vh_b = jnp.broadcast_to(vh_ref[...][None], (tc, ho, h))
    t = jnp.einsum("coh,chw->cow", vh_b, x, preferred_element_type=jnp.float32)
    # Stage 2 (W-side): ONE big matmul with channels folded into M  -> (tc*Ho, Wo)
    t = t.reshape(tc * ho, w).astype(jnp.bfloat16)
    y = jnp.dot(t, vwt_ref[...], preferred_element_type=jnp.float32)
    o_ref[...] = y.reshape(tc, ho, wo).astype(o_ref.dtype)


# ---------------------------------------------------------------------------
# Wrappers.
# ---------------------------------------------------------------------------
def _upsample_kron(x_flat, vh, vw, budget):
    n, hw = x_flat.shape
    ho, wo = int(vh.shape[0]), int(vw.shape[0])
    howo = ho * wo
    # kron(Vh, Vw)^T: (H*W, Ho*Wo).  Binomial-filter weights are exact in bf16.
    kmat = jnp.asarray(np.kron(vh, vw).T, jnp.bfloat16)
    kmat_bytes = 2 * hw * howo
    # Footprint per plane: double-buffered f32 in + out blocks (lane-padded).
    per_plane = 2 * 4 * (_round_up(hw, 128) + _round_up(howo, 128))
    fixed = 2 * kmat_bytes                       # constant block, double-buffered
    tn = _pick_plane_tile(n, per_plane, fixed, budget)
    grid = (pl.cdiv(n, tn),)
    cost = pl.CostEstimate(flops=2 * n * hw * howo, transcendentals=0,
                           bytes_accessed=4 * n * (hw + howo) + kmat_bytes)
    return pl.pallas_call(
        _kron_kernel,
        out_shape=jax.ShapeDtypeStruct((n, howo), x_flat.dtype),
        grid=grid,
        in_specs=[
            pl.BlockSpec((tn, hw), lambda i: (i, 0)),
            pl.BlockSpec((hw, howo), lambda i: (0, 0)),   # constant: fetched once
        ],
        out_specs=pl.BlockSpec((tn, howo), lambda i: (i, 0)),
        compiler_params=pltpu.CompilerParams(
            dimension_semantics=("parallel",),
            vmem_limit_bytes=budget),
        cost_estimate=cost,
    )(x_flat, kmat)


def _upsample_separable(x3, vh, vw, budget):
    n, h, w = x3.shape
    ho, wo = int(vh.shape[0]), int(vw.shape[0])
    vh_b16 = jnp.asarray(vh, jnp.bfloat16)                               # (Ho, H)
    vwt_b16 = jnp.asarray(np.ascontiguousarray(vw.T), jnp.bfloat16)      # (W, Wo)
    # Footprint per plane: double-buffered in/out f32 blocks + f32 intermediate
    # + in-kernel bf16 broadcast of Vh (all (8,128)-padded).
    per_plane = (2 * 4 * _round_up(h, 8) * _round_up(w, 128)
                 + 2 * 4 * _round_up(ho, 8) * _round_up(wo, 128)
                 + 4 * _round_up(ho, 8) * _round_up(w, 128)
                 + 2 * _round_up(ho, 8) * _round_up(h, 128))
    fixed = 2 * 2 * (_round_up(ho, 8) * _round_up(h, 128)
                     + _round_up(w, 8) * _round_up(wo, 128))
    tc = _pick_plane_tile(n, per_plane, fixed, budget)
    grid = (pl.cdiv(n, tc),)
    # TODO(synk): add a spatial (row-band) tiling path for very large H*W where even a
    # single plane plus the constant matrices exceeds the per-step VMEM budget.
    cost = pl.CostEstimate(flops=2 * n * (ho * h * w + ho * w * wo), transcendentals=0,
                           bytes_accessed=4 * n * (h * w + ho * wo) + 2 * (ho * h + w * wo))
    return pl.pallas_call(
        _separable_kernel,
        out_shape=jax.ShapeDtypeStruct((n, ho, wo), x3.dtype),
        grid=grid,
        in_specs=[
            pl.BlockSpec((tc, h, w), lambda i: (i, 0, 0)),
            pl.BlockSpec((ho, h), lambda i: (0, 0)),
            pl.BlockSpec((w, wo), lambda i: (0, 0)),
        ],
        out_specs=pl.BlockSpec((tc, ho, wo), lambda i: (i, 0, 0)),
        compiler_params=pltpu.CompilerParams(
            dimension_semantics=("parallel",),
            vmem_limit_bytes=budget),
        cost_estimate=cost,
    )(x3, vh_b16, vwt_b16)


def upsample_forward(x, pad_type="repl", filt_size=4, stride=2):
    """Forward pass of NCSN Upsample(channels=x.shape[1]) for an NCHW input."""
    b, c, h, w = x.shape
    vh = _upsample_1d_matrix(h, pad_type, filt_size, stride)    # (Ho, H) np.float32
    vw = _upsample_1d_matrix(w, pad_type, filt_size, stride)    # (Wo, W)
    ho, wo = int(vh.shape[0]), int(vw.shape[0])
    n = b * c
    budget = _vmem_budget_bytes()
    kmat_bytes = 2 * (h * w) * (ho * wo)
    if kmat_bytes <= min(_KRON_KMAT_LIMIT, budget // 4):
        out = _upsample_kron(x.reshape(n, h * w), vh, vw, budget)       # (N, Ho*Wo)
    else:
        out = _upsample_separable(x.reshape(n, h, w), vh, vw, budget)   # (N, Ho, Wo)
    return out.reshape(b, c, ho, wo)


# ---------------------------------------------------------------------------
# Pure-JAX reference: faithful translation of the PyTorch forward
# (pad -> conv_transpose2d(stride, padding, groups=C) -> crops).
# ---------------------------------------------------------------------------
def reference_upsample(x, pad_type="repl", filt_size=4, stride=2):
    B, C, H, W = x.shape
    a = np.asarray(_FILTERS[filt_size], np.float64)
    f2 = np.outer(a, a)
    f2 = f2 / f2.sum() * (stride ** 2)
    filt = jnp.asarray(np.tile(f2[None, None], (C, 1, 1, 1)), jnp.float32)   # (C,1,k,k)
    mode = {"repl": "edge", "replicate": "edge",
            "refl": "reflect", "reflect": "reflect", "zero": "constant"}[pad_type]
    xp = jnp.pad(x, ((0, 0), (0, 0), (1, 1), (1, 1)), mode=mode)
    pad_size = (filt_size - 1) // 2
    p = 1 + pad_size
    k = filt_size
    out = jax.lax.conv_general_dilated(
        xp, filt[:, :, ::-1, ::-1],
        window_strides=(1, 1),
        padding=((k - 1 - p, k - 1 - p), (k - 1 - p, k - 1 - p)),
        lhs_dilation=(stride, stride),
        dimension_numbers=("NCHW", "OIHW", "NCHW"),
        feature_group_count=C)
    out = out[:, :, 1:, 1:]
    if filt_size % 2 == 0:
        out = out[:, :, :-1, :-1]
    return out


if __name__ == "__main__":
    # 1) Small-spatial shape -> Kronecker single-matmul path (the NCSN regime).
    B, C, H, W = 2, 4, 16, 16
    x = jax.random.normal(jax.random.PRNGKey(0), (B, C, H, W), jnp.float32)
    out = jax.block_until_ready(jax.jit(upsample_forward)(x))
    assert out.shape == (B, C, 2 * H, 2 * W), out.shape
    ref = jax.block_until_ready(reference_upsample(x))
    # Error budget: bf16 multiplicands, f32 accumulation; per output the 4 taps have
    # weights summing to 1, so |err| <= 2^-8 * max|x| (~0.017 worst case for N(0,1) data).
    np.testing.assert_allclose(np.asarray(out), np.asarray(ref), rtol=1e-2, atol=2e-2)

    # 2) Larger-spatial shape -> separable channel-batched path.
    x2 = jax.random.normal(jax.random.PRNGKey(1), (1, 8, 48, 32), jnp.float32)
    out2 = jax.block_until_ready(jax.jit(upsample_forward)(x2))
    assert out2.shape == (1, 8, 96, 64), out2.shape
    ref2 = jax.block_until_ready(reference_upsample(x2))
    # Two bf16 rounding stages (input + intermediate): |err| <= ~2 * 2^-8 * max|x|.
    np.testing.assert_allclose(np.asarray(out2), np.asarray(ref2), rtol=1e-2, atol=3e-2)

    print("KERNEL_OK")
</pallas_src>

<mosaic_0001>
module attributes {stable_mosaic.version = 11 : i64} {
  func.func @_kron_kernel(%arg0: i32, %arg1: memref<8x256xf32, #tpu.memory_space<vmem>>, %arg2: memref<256x1024xbf16, #tpu.memory_space<vmem>>, %arg3: memref<8x1024xf32, #tpu.memory_space<vmem>>) attributes {dimension_semantics = [#tpu.dimension_semantics<parallel>], iteration_bounds = array<i64: 1>, scalar_prefetch = 0 : i64, scratch_operands = 0 : i64, tpu.core_type = #tpu.core_type<tc>, window_params = [{transform_indices = @transform_0, window_bounds = array<i64: 8, 256>}, {pipeline_mode = #tpu.pipeline_mode<synchronous>, transform_indices = @transform_1, window_bounds = array<i64: 256, 1024>}, {transform_indices = @transform_2, window_bounds = array<i64: 8, 1024>}]} {
    %c0 = arith.constant 0 : index
    %c0_0 = arith.constant 0 : index
    %0 = vector.load %arg1[%c0, %c0_0] : memref<8x256xf32, #tpu.memory_space<vmem>>, vector<8x256xf32>
    %1 = arith.truncf %0 : vector<8x256xf32> to vector<8x256xbf16>
    %c0_1 = arith.constant 0 : index
    %c0_2 = arith.constant 0 : index
    %2 = vector.load %arg2[%c0_1, %c0_2] : memref<256x1024xbf16, #tpu.memory_space<vmem>>, vector<256x1024xbf16>
    %cst = arith.constant dense<0.000000e+00> : vector<8x1024xf32>
    %3 = tpu.matmul %1, %2, %cst {dimension_numbers = #tpu.dot_dimension_numbers<[1], [0], [0], [1], [0, 0, 1, 1], [], []>} : vector<8x256xbf16>, vector<256x1024xbf16>, vector<8x1024xf32> -> vector<8x1024xf32>
    %c0_3 = arith.constant 0 : index
    %c0_4 = arith.constant 0 : index
    %4 = vector.load %arg3[%c0_3, %c0_4] : memref<8x1024xf32, #tpu.memory_space<vmem>>, vector<8x1024xf32>
    tpu.vector_store %arg3[%c0_3, %c0_4], %3 {strides = array<i32>} : memref<8x1024xf32, #tpu.memory_space<vmem>>, vector<8x1024xf32>,
    return
  }
  func.func @transform_0(%arg0: i32) -> (i32, i32) {
    %c0_i32 = arith.constant 0 : i32
    %c0_i32_0 = arith.constant 0 : i32
    return %arg0, %c0_i32 : i32, i32
  }
  func.func @transform_1(%arg0: i32) -> (i32, i32) {
    %c0_i32 = arith.constant 0 : i32
    %c0_i32_0 = arith.constant 0 : i32
    %c0_i32_1 = arith.constant 0 : i32
    return %c0_i32, %c0_i32_0 : i32, i32
  }
  func.func @transform_2(%arg0: i32) -> (i32, i32) {
    %c0_i32 = arith.constant 0 : i32
    %c0_i32_0 = arith.constant 0 : i32
    return %arg0, %c0_i32 : i32, i32
  }
}

</mosaic_0001>

<bundles_post_ra>
// kernel: upsample_forward.1
= control target key start
LH: loop header
LB: loop body
LE: loop exit
PB: predicated region body
PF: predicated region fallthrough
CT: control target
= control target key end

     0   :  { %7 = vsyncpa [#allocation3], 0  ;;  %s1127_s9 = smov [#allocation2]   ;;  %s1190_s0 = inlined_call_operand.vmem [shape: f32[8,256], index: 0, kind: input, shape index: {}]   ;;  %s1191_s1 = inlined_call_operand.hbm [shape: bf16[256,1024], index: 1, kind: input, shape index: {}]   ;;  %s1192_s2 = inlined_call_operand.vmem [shape: f32[8,1024], index: 2, kind: output, shape index: {}]  }
   0x1   :  { %s15_s10 = sshll.u32 %s1127_s9, 4  ;;  %s16_s10 = int_to_ptr.vmem [resolvable:$true] %s15_s10 }
   0x2   :  { %s1113_s11 = scalar_lea.vmem %s16_s10, 16384  ;;  %p1118_p1 = scmp.lt.s32.totalorder %s16_s10, %s16_s10 }
   0x3   :  { %p1114_p0 = scmp.ne.s32.totalorder %s16_s10, %s1113_s11  ;;  %p1119_p2 = scmp.lt.s32.totalorder %s1113_s11, %s1113_s11 }
   0x5   :  { %p1120_p3 = por %p1119_p2, %p1118_p1 }
   0x7   :  { %p1121_p4 = pnand %p1120_p3, %p1114_p0 }
   0x9   :  { %1124 = shalt.err (!%p1121_p4)
}
   0xa   :  { %s1128_s12 = smov 512   ;;  %s1129_s13 = smov 32  }
   0xb   :  { %21 = dma.hbm_to_vmem [thread:$0]  %s1191_s1, 16384, %s16_s10, [#allocation3], %s1128_s12, %s1128_s12, %s1129_s13  }
   0xc   :  { %1125 = dma.done.wait [#allocation3], 16384  }
   0xd   :  { %1126 = vsyncadd [#allocation3], 4294950912  ;;  %v85_v0 = vld [vmem:[#allocation2 + $0x1c0] sm:$0xff]  ;;  %v86_v2 = vld [vmem:[#allocation2 + $0x1c8] sm:$0xff] }
   0xe   :  { %v89_v1 = vld [vmem:[#allocation2 + $0x1e0] sm:$0xff]  ;;  %v90_v4 = vld [vmem:[#allocation2 + $0x1e8] sm:$0xff] }
   0xf   :  { %v1031_v3 = vcombine.high %v85_v0, %v89_v1  ;;  %v1030_v5 = vcombine.low %v85_v0, %v89_v1  ;;  %v77_v6 = vld [vmem:[#allocation2 + $0x180] sm:$0xff]  ;;  %v1033_v8 = vcombine.high %v86_v2, %v90_v4  ;;  %v1032_v9 = vcombine.low %v86_v2, %v90_v4  ;;  %v78_v11 = vld [vmem:[#allocation2 + $0x188] sm:$0xff] }
  0x10   :  { %v81_v7 = vld [vmem:[#allocation2 + $0x1a0] sm:$0xff]  ;;  %v82_v12 = vld [vmem:[#allocation2 + $0x1a8] sm:$0xff] }
  0x11   :  { %v1023_v10 = vcombine.high %v77_v6, %v81_v7  ;;  %v69_v13 = vld [vmem:[#allocation2 + $0x140] sm:$0xff]  ;;  %797 = vmatprep.subr.bf16.mxu0 %v1031_v3  ;;  %v1025_v14 = vcombine.high %v78_v11, %v82_v12  ;;  %v70_v16 = vld [vmem:[#allocation2 + $0x148] sm:$0xff]  ;;  %838 = vmatprep.subr.bf16.mxu1 %v1033_v8  ;;  %v1022_v18 = vcombine.low %v77_v6, %v81_v7 }
  0x12   :  { %v73_v15 = vld [vmem:[#allocation2 + $0x160] sm:$0xff]  ;;  %v74_v17 = vld [vmem:[#allocation2 + $0x168] sm:$0xff]  ;;  %798 = vmatpush1.bf16.msra.mxu0 %v1030_v5  ;;  %839 = vmatpush1.bf16.msra.mxu1 %v1032_v9  ;;  %v1024_v19 = vcombine.low %v78_v11, %v82_v12 }
  0x13   :  { %799 = vmatprep.subr.bf16.mxu0 %v1023_v10  ;;  %v1015_v20 = vcombine.high %v69_v13, %v73_v15  ;;  %840 = vmatprep.subr.bf16.mxu1 %v1025_v14  ;;  %v1017_v21 = vcombine.high %v70_v16, %v74_v17  ;;  %v61_v22 = vld [vmem:[#allocation2 + $0x100] sm:$0xff]  ;;  %v62_v24 = vld [vmem:[#allocation2 + $0x108] sm:$0xff]  ;;  %v1014_v26 = vcombine.low %v69_v13, %v73_v15 }
  0x14   :  { %v65_v23 = vld [vmem:[#allocation2 + $0x120] sm:$0xff]  ;;  %v66_v25 = vld [vmem:[#allocation2 + $0x128] sm:$0xff]  ;;  %v1016_v27 = vcombine.low %v70_v16, %v74_v17 }
  0x15   :  { %v1007_v28 = vcombine.high %v61_v22, %v65_v23  ;;  %v1009_v29 = vcombine.high %v62_v24, %v66_v25  ;;  %v53_v30 = vld [vmem:[#allocation2 + $0xc0] sm:$0xff]  ;;  %v54_v32 = vld [vmem:[#allocation2 + $0xc8] sm:$0xff]  ;;  %v1006_v34 = vcombine.low %v61_v22, %v65_v23  ;;  %v1008_v35 = vcombine.low %v62_v24, %v66_v25 }
  0x16   :  { %800 = vmatpush1.bf16.msra.mxu0 %v1022_v18  ;;  %841 = vmatpush1.bf16.msra.mxu1 %v1024_v19  ;;  %v57_v31 = vld [vmem:[#allocation2 + $0xe0] sm:$0xff]  ;;  %v58_v33 = vld [vmem:[#allocation2 + $0xe8] sm:$0xff] }
  0x17   :  { %801 = vmatprep.subr.bf16.mxu0 %v1015_v20  ;;  %842 = vmatprep.subr.bf16.mxu1 %v1017_v21  ;;  %v999_v36 = vcombine.high %v53_v30, %v57_v31  ;;  %v1001_v37 = vcombine.high %v54_v32, %v58_v33  ;;  %v45_v38 = vld [vmem:[#allocation2 + $0x80] sm:$0xff]  ;;  %v46_v40 = vld [vmem:[#allocation2 + $0x88] sm:$0xff]  ;;  %v998_v42 = vcombine.low %v53_v30, %v57_v31 }
  0x18   :  { %v49_v39 = vld [vmem:[#allocation2 + $0xa0] sm:$0xff]  ;;  %v50_v41 = vld [vmem:[#allocation2 + $0xa8] sm:$0xff]  ;;  %v1000_v43 = vcombine.low %v54_v32, %v58_v33 }
  0x19   :  { %v991_v44 = vcombine.high %v45_v38, %v49_v39  ;;  %v993_v45 = vcombine.high %v46_v40, %v50_v41  ;;  %v37_v46 = vld [vmem:[#allocation2 + $0x40] sm:$0xff]  ;;  %v38_v48 = vld [vmem:[#allocation2 + $0x48] sm:$0xff]  ;;  %v990_v50 = vcombine.low %v45_v38, %v49_v39  ;;  %v992_v51 = vcombine.low %v46_v40, %v50_v41 }
  0x1a   :  { %802 = vmatpush1.bf16.msra.mxu0 %v1014_v26  ;;  %843 = vmatpush1.bf16.msra.mxu1 %v1016_v27  ;;  %v41_v47 = vld [vmem:[#allocation2 + $0x60] sm:$0xff]  ;;  %v42_v49 = vld [vmem:[#allocation2 + $0x68] sm:$0xff] }
  0x1b   :  { %803 = vmatprep.subr.bf16.mxu0 %v1007_v28  ;;  %844 = vmatprep.subr.bf16.mxu1 %v1009_v29  ;;  %v983_v52 = vcombine.high %v37_v46, %v41_v47  ;;  %v26_v53 = vld [vmem:[%s1190_s0 + $0x8] sm:$0xff]  ;;  %v985_v54 = vcombine.high %v38_v48, %v42_v49  ;;  %v29_v55 = vld [vmem:[#allocation2] sm:$0xff]  ;;  %v982_v60 = vcombine.low %v37_v46, %v41_v47 }
  0x1c   :  { %v33_v56 = vld [vmem:[#allocation2 + $0x20] sm:$0xff]  ;;  %v1151_v57 = vpack.c.bf16 %v26_v53, %v26_v53  ;;  %v30_v58 = vld [vmem:[#allocation2 + $0x8] sm:$0xff]  ;;  %v984_v61 = vcombine.low %v38_v48, %v42_v49 }
  0x1d   :  { %v34_v59 = vld [vmem:[#allocation2 + $0x28] sm:$0xff]  ;;  %v975_v62 = vcombine.high %v29_v55, %v33_v56  ;;  %v149_v0 = vld [vmem:[#allocation2 + $0x3c0] sm:$0xff]  ;;  %v974_v4 = vcombine.low %v29_v55, %v33_v56 }
  0x1e   :  { %804 = vmatpush1.bf16.msra.mxu0 %v1006_v34  ;;  %845 = vmatpush1.bf16.msra.mxu1 %v1008_v35  ;;  %v977_v63 = vcombine.high %v30_v58, %v34_v59  ;;  %v153_v1 = vld [vmem:[#allocation2 + $0x3e0] sm:$0xff]  ;;  %v150_v2 = vld [vmem:[#allocation2 + $0x3c8] sm:$0xff]  ;;  %v976_v5 = vcombine.low %v30_v58, %v34_v59 }
  0x1f   :  { %805 = vmatprep.subr.bf16.mxu0 %v999_v36  ;;  %846 = vmatprep.subr.bf16.mxu1 %v1001_v37  ;;  %v154_v3 = vld [vmem:[#allocation2 + $0x3e8] sm:$0xff]  ;;  %v1095_v6 = vcombine.high %v149_v0, %v153_v1  ;;  %v141_v8 = vld [vmem:[#allocation2 + $0x380] sm:$0xff]  ;;  %v1094_v12 = vcombine.low %v149_v0, %v153_v1  ;;  %v87_v1 = vld [vmem:[#allocation2 + $0x1d0] sm:$0xff] }
  0x20   :  { %829 = vmatprep.mubr.bf16.mxu0 %v1151_v57  ;;  %870 = vmatprep.mubr.bf16.mxu1 %v1151_v57  ;;  %v1097_v7 = vcombine.high %v150_v2, %v154_v3  ;;  %v145_v9 = vld [vmem:[#allocation2 + $0x3a0] sm:$0xff]  ;;  %v142_v10 = vld [vmem:[#allocation2 + $0x388] sm:$0xff]  ;;  %v1096_v13 = vcombine.low %v150_v2, %v154_v3  ;;  %v91_v2 = vld [vmem:[#allocation2 + $0x1f0] sm:$0xff] }
  0x21   :  { %v146_v11 = vld [vmem:[#allocation2 + $0x3a8] sm:$0xff]  ;;  %v1087_v14 = vcombine.high %v141_v8, %v145_v9  ;;  %v133_v16 = vld [vmem:[#allocation2 + $0x340] sm:$0xff]  ;;  %v1086_v20 = vcombine.low %v141_v8, %v145_v9  ;;  %v88_v3 = vld [vmem:[#allocation2 + $0x1d8] sm:$0xff]  ;;  %v1035_v8 = vcombine.high %v87_v1, %v91_v2 }
  0x22   :  { %806 = vmatpush1.bf16.msra.mxu0 %v998_v42  ;;  %847 = vmatpush1.bf16.msra.mxu1 %v1000_v43  ;;  %v1089_v15 = vcombine.high %v142_v10, %v146_v11  ;;  %v137_v17 = vld [vmem:[#allocation2 + $0x360] sm:$0xff]  ;;  %v134_v18 = vld [vmem:[#allocation2 + $0x348] sm:$0xff]  ;;  %v1088_v21 = vcombine.low %v142_v10, %v146_v11  ;;  %v79_v10 = vld [vmem:[#allocation2 + $0x190] sm:$0xff] }
  0x23   :  { %807 = vmatprep.subr.bf16.mxu0 %v991_v44  ;;  %848 = vmatprep.subr.bf16.mxu1 %v993_v45  ;;  %v138_v19 = vld [vmem:[#allocation2 + $0x368] sm:$0xff]  ;;  %v1079_v22 = vcombine.high %v133_v16, %v137_v17  ;;  %v125_v24 = vld [vmem:[#allocation2 + $0x300] sm:$0xff]  ;;  %v1078_v28 = vcombine.low %v133_v16, %v137_v17  ;;  %v83_v11 = vld [vmem:[#allocation2 + $0x1b0] sm:$0xff] }
  0x24   :  { %v1081_v23 = vcombine.high %v134_v18, %v138_v19  ;;  %v129_v25 = vld [vmem:[#allocation2 + $0x320] sm:$0xff]  ;;  %v126_v26 = vld [vmem:[#allocation2 + $0x308] sm:$0xff]  ;;  %v1080_v29 = vcombine.low %v134_v18, %v138_v19  ;;  %v1027_v17 = vcombine.high %v79_v10, %v83_v11  ;;  %v71_v19 = vld [vmem:[#allocation2 + $0x150] sm:$0xff] }
  0x25   :  { %v130_v27 = vld [vmem:[#allocation2 + $0x328] sm:$0xff]  ;;  %v1071_v30 = vcombine.high %v125_v24, %v129_v25  ;;  %v117_v32 = vld [vmem:[#allocation2 + $0x2c0] sm:$0xff]  ;;  %v1070_v36 = vcombine.low %v125_v24, %v129_v25 }
  0x26   :  { %808 = vmatpush1.bf16.msra.mxu0 %v990_v50  ;;  %849 = vmatpush1.bf16.msra.mxu1 %v992_v51  ;;  %v1073_v31 = vcombine.high %v126_v26, %v130_v27  ;;  %v121_v33 = vld [vmem:[#allocation2 + $0x2e0] sm:$0xff]  ;;  %v118_v34 = vld [vmem:[#allocation2 + $0x2c8] sm:$0xff]  ;;  %v1072_v37 = vcombine.low %v126_v26, %v130_v27  ;;  %v63_v27 = vld [vmem:[#allocation2 + $0x110] sm:$0xff] }
  0x27   :  { %809 = vmatprep.subr.bf16.mxu0 %v983_v52  ;;  %850 = vmatprep.subr.bf16.mxu1 %v985_v54  ;;  %v122_v35 = vld [vmem:[#allocation2 + $0x2e8] sm:$0xff]  ;;  %v1063_v38 = vcombine.high %v117_v32, %v121_v33  ;;  %v109_v40 = vld [vmem:[#allocation2 + $0x280] sm:$0xff]  ;;  %v1062_v44 = vcombine.low %v117_v32, %v121_v33 }
  0x28   :  { %v1065_v39 = vcombine.high %v118_v34, %v122_v35  ;;  %v113_v41 = vld [vmem:[#allocation2 + $0x2a0] sm:$0xff]  ;;  %v110_v42 = vld [vmem:[#allocation2 + $0x288] sm:$0xff]  ;;  %v1064_v45 = vcombine.low %v118_v34, %v122_v35  ;;  %v55_v35 = vld [vmem:[#allocation2 + $0xd0] sm:$0xff] }
  0x29   :  { %v114_v43 = vld [vmem:[#allocation2 + $0x2a8] sm:$0xff]  ;;  %v1055_v46 = vcombine.high %v109_v40, %v113_v41  ;;  %v101_v48 = vld [vmem:[#allocation2 + $0x240] sm:$0xff]  ;;  %v1054_v52 = vcombine.low %v109_v40, %v113_v41 }
  0x2a   :  { %810 = vmatpush1.bf16.msra.mxu0 %v982_v60  ;;  %851 = vmatpush1.bf16.msra.mxu1 %v984_v61  ;;  %v1057_v47 = vcombine.high %v110_v42, %v114_v43  ;;  %v105_v49 = vld [vmem:[#allocation2 + $0x260] sm:$0xff]  ;;  %v102_v50 = vld [vmem:[#allocation2 + $0x248] sm:$0xff]  ;;  %v1056_v53 = vcombine.low %v110_v42, %v114_v43  ;;  %v47_v42 = vld [vmem:[#allocation2 + $0x90] sm:$0xff] }
  0x2b   :  { %811 = vmatprep.subr.bf16.mxu0 %v975_v62  ;;  %852 = vmatprep.subr.bf16.mxu1 %v977_v63  ;;  %v106_v51 = vld [vmem:[#allocation2 + $0x268] sm:$0xff]  ;;  %v1047_v54 = vcombine.high %v101_v48, %v105_v49  ;;  %v93_v56 = vld [vmem:[#allocation2 + $0x200] sm:$0xff]  ;;  %v1046_v61 = vcombine.low %v101_v48, %v105_v49  ;;  %v51_v43 = vld [vmem:[#allocation2 + $0xb0] sm:$0xff] }
  0x2c   :  { %v1049_v55 = vcombine.high %v102_v50, %v106_v51  ;;  %v97_v58 = vld [vmem:[#allocation2 + $0x220] sm:$0xff]  ;;  %v94_v59 = vld [vmem:[#allocation2 + $0x208] sm:$0xff]  ;;  %v1048_v62 = vcombine.low %v102_v50, %v106_v51  ;;  %v995_v48 = vcombine.high %v47_v42, %v51_v43  ;;  %v39_v50 = vld [vmem:[#allocation2 + $0x50] sm:$0xff] }
  0x2d   :  { %v98_v60 = vld [vmem:[#allocation2 + $0x228] sm:$0xff]  ;;  %v1039_v63 = vcombine.high %v93_v56, %v97_v58  ;;  %v43_v51 = vld [vmem:[#allocation2 + $0x70] sm:$0xff] }
  0x2e   :  { %812 = vmatpush1.bf16.msra.mxu0 %v974_v4  ;;  %853 = vmatpush1.bf16.msra.mxu1 %v976_v5  ;;  %v1041_v0 = vcombine.high %v94_v59, %v98_v60  ;;  %v92_v4 = vld [vmem:[#allocation2 + $0x1f8] sm:$0xff]  ;;  %v1038_v5 = vcombine.low %v93_v56, %v97_v58  ;;  %v987_v56 = vcombine.high %v39_v50, %v43_v51 }
  0x2f   :  { %813 = vmatprep.subr.bf16.mxu0 %v1095_v6  ;;  %854 = vmatprep.subr.bf16.mxu1 %v1097_v7  ;;  %v25_v6 = vld [vmem:[%s1190_s0] sm:$0xff]  ;;  %v1040_v7 = vcombine.low %v94_v59, %v98_v60  ;;  %v1037_v9 = vcombine.high %v88_v3, %v92_v4  ;;  %v1036_v16 = vcombine.low %v88_v3, %v92_v4  ;;  %v31_v59 = vld [vmem:[#allocation2 + $0x10] sm:$0xff] }
  0x30   :  { %v35_v60 = vld [vmem:[#allocation2 + $0x30] sm:$0xff] }
  0x31   :  { %v151_v3 = vld [vmem:[#allocation2 + $0x3d0] sm:$0xff] }
  0x32   :  { %814 = vmatpush2.bf16.msra.mxu0 %v1094_v12  ;;  %855 = vmatpush2.bf16.msra.mxu1 %v1096_v13  ;;  %v1158_v12 = vpack.c.bf16 %v25_v6, %v25_v6  ;;  %v80_v13 = vld [vmem:[#allocation2 + $0x198] sm:$0xff]  ;;  %v155_v4 = vld [vmem:[#allocation2 + $0x3f0] sm:$0xff] }
  0x33   :  { %815 = vmatprep.subr.bf16.mxu0 %v1087_v14  ;;  %856 = vmatprep.subr.bf16.mxu1 %v1089_v15  ;;  %v84_v14 = vld [vmem:[#allocation2 + $0x1b8] sm:$0xff]  ;;  %v1034_v15 = vcombine.low %v87_v1, %v91_v2  ;;  %v979_v1 = vcombine.high %v31_v59, %v35_v60 }
  0x34   :  { %v1029_v18 = vcombine.high %v80_v13, %v84_v14  ;;  %v1028_v24 = vcombine.low %v80_v13, %v84_v14  ;;  %v156_v6 = vld [vmem:[#allocation2 + $0x3f8] sm:$0xff]  ;;  %v147_v13 = vld [vmem:[#allocation2 + $0x3b0] sm:$0xff] }
  0x35   :  { %v144_v14 = vld [vmem:[#allocation2 + $0x398] sm:$0xff] }
  0x36   :  { %816 = vmatpush2.bf16.msra.mxu0 %v1086_v20  ;;  %857 = vmatpush2.bf16.msra.mxu1 %v1088_v21  ;;  %v75_v20 = vld [vmem:[#allocation2 + $0x170] sm:$0xff]  ;;  %v72_v21 = vld [vmem:[#allocation2 + $0x158] sm:$0xff] }
  0x37   :  { %817 = vmatprep.subr.bf16.mxu0 %v1079_v22  ;;  %858 = vmatprep.subr.bf16.mxu1 %v1081_v23  ;;  %v76_v22 = vld [vmem:[#allocation2 + $0x178] sm:$0xff]  ;;  %v1026_v23 = vcombine.low %v79_v10, %v83_v11  ;;  %v1019_v25 = vcombine.high %v71_v19, %v75_v20  ;;  %v143_v11 = vld [vmem:[#allocation2 + $0x390] sm:$0xff] }
  0x38   :  { %v1021_v26 = vcombine.high %v72_v21, %v76_v22  ;;  %v1020_v32 = vcombine.low %v72_v21, %v76_v22  ;;  %v139_v21 = vld [vmem:[#allocation2 + $0x370] sm:$0xff]  ;;  %v136_v22 = vld [vmem:[#allocation2 + $0x358] sm:$0xff] }
  0x3a   :  { %818 = vmatpush2.bf16.msra.mxu0 %v1078_v28  ;;  %859 = vmatpush2.bf16.msra.mxu1 %v1080_v29  ;;  %v67_v28 = vld [vmem:[#allocation2 + $0x130] sm:$0xff]  ;;  %v64_v29 = vld [vmem:[#allocation2 + $0x118] sm:$0xff] }
  0x3b   :  { %819 = vmatprep.subr.bf16.mxu0 %v1071_v30  ;;  %860 = vmatprep.subr.bf16.mxu1 %v1073_v31  ;;  %v68_v30 = vld [vmem:[#allocation2 + $0x138] sm:$0xff]  ;;  %v1018_v31 = vcombine.low %v71_v19, %v75_v20  ;;  %v1011_v33 = vcombine.high %v63_v27, %v67_v28  ;;  %v135_v20 = vld [vmem:[#allocation2 + $0x350] sm:$0xff] }
  0x3c   :  { %v1013_v34 = vcombine.high %v64_v29, %v68_v30  ;;  %v1012_v40 = vcombine.low %v64_v29, %v68_v30  ;;  %v131_v29 = vld [vmem:[#allocation2 + $0x330] sm:$0xff]  ;;  %v128_v30 = vld [vmem:[#allocation2 + $0x318] sm:$0xff] }
  0x3e   :  { %820 = vmatpush2.bf16.msra.mxu0 %v1070_v36  ;;  %861 = vmatpush2.bf16.msra.mxu1 %v1072_v37  ;;  %v59_v36 = vld [vmem:[#allocation2 + $0xf0] sm:$0xff]  ;;  %v56_v37 = vld [vmem:[#allocation2 + $0xd8] sm:$0xff] }
  0x3f   :  { %821 = vmatprep.subr.bf16.mxu0 %v1063_v38  ;;  %862 = vmatprep.subr.bf16.mxu1 %v1065_v39  ;;  %v60_v38 = vld [vmem:[#allocation2 + $0xf8] sm:$0xff]  ;;  %v1010_v39 = vcombine.low %v63_v27, %v67_v28  ;;  %v1003_v41 = vcombine.high %v55_v35, %v59_v36  ;;  %v127_v28 = vld [vmem:[#allocation2 + $0x310] sm:$0xff] }
  0x42   :  { %822 = vmatpush2.bf16.msra.mxu0 %v1062_v44  ;;  %863 = vmatpush2.bf16.msra.mxu1 %v1064_v45  ;;  %v48_v44 = vld [vmem:[#allocation2 + $0x98] sm:$0xff] }
  0x43   :  { %823 = vmatprep.subr.bf16.mxu0 %v1055_v46  ;;  %864 = vmatprep.subr.bf16.mxu1 %v1057_v47  ;;  %v52_v45 = vld [vmem:[#allocation2 + $0xb8] sm:$0xff]  ;;  %v1002_v46 = vcombine.low %v55_v35, %v59_v36  ;;  %v1004_v47 = vcombine.low %v56_v37, %v60_v38  ;;  %v119_v36 = vld [vmem:[#allocation2 + $0x2d0] sm:$0xff] }
  0x44   :  { %v997_v49 = vcombine.high %v48_v44, %v52_v45 }
  0x46   :  { %824 = vmatpush2.bf16.msra.mxu0 %v1054_v52  ;;  %865 = vmatpush2.bf16.msra.mxu1 %v1056_v53  ;;  %v40_v52 = vld [vmem:[#allocation2 + $0x58] sm:$0xff] }
  0x47   :  { %825 = vmatprep.subr.bf16.mxu0 %v1047_v54  ;;  %866 = vmatprep.subr.bf16.mxu1 %v1049_v55  ;;  %v44_v53 = vld [vmem:[#allocation2 + $0x78] sm:$0xff]  ;;  %v994_v54 = vcombine.low %v47_v42, %v51_v43  ;;  %v996_v55 = vcombine.low %v48_v44, %v52_v45  ;;  %v111_v43 = vld [vmem:[#allocation2 + $0x290] sm:$0xff] }
  0x48   :  { %v989_v58 = vcombine.high %v40_v52, %v44_v53  ;;  %v115_v44 = vld [vmem:[#allocation2 + $0x2b0] sm:$0xff]  ;;  %v112_v45 = vld [vmem:[#allocation2 + $0x298] sm:$0xff] }
  0x4a   :  { %826 = vmatpush2.bf16.msra.mxu0 %v1046_v61  ;;  %867 = vmatpush2.bf16.msra.mxu1 %v1048_v62  ;;  %v32_v61 = vld [vmem:[#allocation2 + $0x18] sm:$0xff] }
  0x4b   :  { %827 = vmatprep.subr.bf16.mxu0 %v1039_v63  ;;  %868 = vmatprep.subr.bf16.mxu1 %v1041_v0  ;;  %v36_v62 = vld [vmem:[#allocation2 + $0x38] sm:$0xff]  ;;  %v986_v63 = vcombine.low %v39_v50, %v43_v51  ;;  %v988_v0 = vcombine.low %v40_v52, %v44_v53  ;;  %v103_v51 = vld [vmem:[#allocation2 + $0x250] sm:$0xff] }
  0x4c   :  { %v981_v2 = vcombine.high %v32_v61, %v36_v62  ;;  %v107_v52 = vld [vmem:[#allocation2 + $0x270] sm:$0xff]  ;;  %v104_v53 = vld [vmem:[#allocation2 + $0x258] sm:$0xff] }
  0x4e   :  { %828 = vmatpush2.bf16.msra.mxu0 %v1038_v5  ;;  %869 = vmatpush2.bf16.msra.mxu1 %v1040_v7  ;;  %v152_v5 = vld [vmem:[#allocation2 + $0x3d8] sm:$0xff]  ;;  %v978_v7 = vcombine.low %v31_v59, %v35_v60  ;;  %v95_v60 = vld [vmem:[#allocation2 + $0x210] sm:$0xff] }
  0x4f   :  { %879 = vmatprep.subr.bf16.mxu0 %v1035_v8  ;;  %920 = vmatprep.subr.bf16.mxu1 %v1037_v9  ;;  %v980_v8 = vcombine.low %v32_v61, %v36_v62  ;;  %v1099_v9 = vcombine.high %v151_v3, %v155_v4  ;;  %v1101_v10 = vcombine.high %v152_v5, %v156_v6  ;;  %v99_v61 = vld [vmem:[#allocation2 + $0x230] sm:$0xff]  ;;  %v96_v62 = vld [vmem:[#allocation2 + $0x218] sm:$0xff] }
  0x51   :  { %830 = vmatmul.mubr.bf16.vlgmr.msra.gmra.mxu0 %v1158_v12  ;;  %871 = vmatmul.mubr.bf16.vlgmr.msra.gmra.mxu1 %v1158_v12 }
  0x52   :  { %880 = vmatpush1.bf16.msra.mxu0 %v1034_v15  ;;  %921 = vmatpush1.bf16.msra.mxu1 %v1036_v16  ;;  %v148_v15 = vld [vmem:[#allocation2 + $0x3b8] sm:$0xff]  ;;  %v1098_v16 = vcombine.low %v151_v3, %v155_v4  ;;  %v1042_v4 = vcombine.low %v95_v60, %v99_v61 }
  0x53   :  { %881 = vmatprep.subr.bf16.mxu0 %v1027_v17  ;;  %922 = vmatprep.subr.bf16.mxu1 %v1029_v18  ;;  %v1100_v17 = vcombine.low %v152_v5, %v156_v6  ;;  %v1091_v18 = vcombine.high %v143_v11, %v147_v13  ;;  %v1093_v19 = vcombine.high %v144_v14, %v148_v15 }
  0x54   :  { %911 = vmatprep.mubr.bf16.mxu0 %v1151_v57  ;;  %952 = vmatprep.mubr.bf16.mxu1 %v1151_v57  ;;  %v1005_v57 = vcombine.high %v56_v37, %v60_v38  ;;  %v123_v37 = vld [vmem:[#allocation2 + $0x2f0] sm:$0xff]  ;;  %v120_v38 = vld [vmem:[#allocation2 + $0x2d8] sm:$0xff] }
  0x56   :  { %882 = vmatpush1.bf16.msra.mxu0 %v1026_v23  ;;  %923 = vmatpush1.bf16.msra.mxu1 %v1028_v24  ;;  %v140_v23 = vld [vmem:[#allocation2 + $0x378] sm:$0xff]  ;;  %v1090_v24 = vcombine.low %v143_v11, %v147_v13 }
  0x57   :  { %883 = vmatprep.subr.bf16.mxu0 %v1019_v25  ;;  %924 = vmatprep.subr.bf16.mxu1 %v1021_v26  ;;  %v1092_v25 = vcombine.low %v144_v14, %v148_v15  ;;  %v1083_v26 = vcombine.high %v135_v20, %v139_v21  ;;  %v1085_v27 = vcombine.high %v136_v22, %v140_v23 }
  0x5a   :  { %884 = vmatpush1.bf16.msra.mxu0 %v1018_v31  ;;  %925 = vmatpush1.bf16.msra.mxu1 %v1020_v32  ;;  %v132_v31 = vld [vmem:[#allocation2 + $0x338] sm:$0xff]  ;;  %v1082_v32 = vcombine.low %v135_v20, %v139_v21 }
  0x5b   :  { %885 = vmatprep.subr.bf16.mxu0 %v1011_v33  ;;  %926 = vmatprep.subr.bf16.mxu1 %v1013_v34  ;;  %v1084_v33 = vcombine.low %v136_v22, %v140_v23  ;;  %v1075_v34 = vcombine.high %v127_v28, %v131_v29  ;;  %v1077_v35 = vcombine.high %v128_v30, %v132_v31 }
  0x5e   :  { %886 = vmatpush1.bf16.msra.mxu0 %v1010_v39  ;;  %927 = vmatpush1.bf16.msra.mxu1 %v1012_v40  ;;  %v124_v39 = vld [vmem:[#allocation2 + $0x2f8] sm:$0xff]  ;;  %v1074_v40 = vcombine.low %v127_v28, %v131_v29 }
  0x5f   :  { %887 = vmatprep.subr.bf16.mxu0 %v1003_v41  ;;  %928 = vmatprep.subr.bf16.mxu1 %v1005_v57  ;;  %v1076_v41 = vcombine.low %v128_v30, %v132_v31  ;;  %v1067_v57 = vcombine.high %v119_v36, %v123_v37  ;;  %v1069_v42 = vcombine.high %v120_v38, %v124_v39 }
  0x62   :  { %888 = vmatpush1.bf16.msra.mxu0 %v1002_v46  ;;  %929 = vmatpush1.bf16.msra.mxu1 %v1004_v47  ;;  %v116_v46 = vld [vmem:[#allocation2 + $0x2b8] sm:$0xff]  ;;  %v1066_v47 = vcombine.low %v119_v36, %v123_v37 }
  0x63   :  { %889 = vmatprep.subr.bf16.mxu0 %v995_v48  ;;  %930 = vmatprep.subr.bf16.mxu1 %v997_v49  ;;  %v1068_v48 = vcombine.low %v120_v38, %v124_v39  ;;  %v1059_v49 = vcombine.high %v111_v43, %v115_v44  ;;  %v1061_v50 = vcombine.high %v112_v45, %v116_v46 }
  0x66   :  { %890 = vmatpush1.bf16.msra.mxu0 %v994_v54  ;;  %931 = vmatpush1.bf16.msra.mxu1 %v996_v55  ;;  %v108_v54 = vld [vmem:[#allocation2 + $0x278] sm:$0xff]  ;;  %v1058_v55 = vcombine.low %v111_v43, %v115_v44 }
  0x67   :  { %891 = vmatprep.subr.bf16.mxu0 %v987_v56  ;;  %932 = vmatprep.subr.bf16.mxu1 %v989_v58  ;;  %v1060_v56 = vcombine.low %v112_v45, %v116_v46  ;;  %v1051_v58 = vcombine.high %v103_v51, %v107_v52  ;;  %v1053_v59 = vcombine.high %v104_v53, %v108_v54 }
  0x6a   :  { %892 = vmatpush1.bf16.msra.mxu0 %v986_v63  ;;  %933 = vmatpush1.bf16.msra.mxu1 %v988_v0  ;;  %v100_v63 = vld [vmem:[#allocation2 + $0x238] sm:$0xff]  ;;  %v1050_v0 = vcombine.low %v103_v51, %v107_v52 }
  0x6b   :  { %893 = vmatprep.subr.bf16.mxu0 %v979_v1  ;;  %934 = vmatprep.subr.bf16.mxu1 %v981_v2  ;;  %v1052_v1 = vcombine.low %v104_v53, %v108_v54  ;;  %v1043_v2 = vcombine.high %v95_v60, %v99_v61  ;;  %v1045_v3 = vcombine.high %v96_v62, %v100_v63 }
  0x6c   :  { %v1044_v5 = vcombine.low %v96_v62, %v100_v63 }
  0x6e   :  { %894 = vmatpush1.bf16.msra.mxu0 %v978_v7  ;;  %935 = vmatpush1.bf16.msra.mxu1 %v980_v8 }
  0x6f   :  { %895 = vmatprep.subr.bf16.mxu0 %v1099_v9  ;;  %936 = vmatprep.subr.bf16.mxu1 %v1101_v10 }
  0x72   :  { %896 = vmatpush2.bf16.msra.mxu0 %v1098_v16  ;;  %937 = vmatpush2.bf16.msra.mxu1 %v1100_v17 }
  0x73   :  { %897 = vmatprep.subr.bf16.mxu0 %v1091_v18  ;;  %938 = vmatprep.subr.bf16.mxu1 %v1093_v19 }
  0x76   :  { %898 = vmatpush2.bf16.msra.mxu0 %v1090_v24  ;;  %939 = vmatpush2.bf16.msra.mxu1 %v1092_v25 }
  0x77   :  { %899 = vmatprep.subr.bf16.mxu0 %v1083_v26  ;;  %940 = vmatprep.subr.bf16.mxu1 %v1085_v27 }
  0x7a   :  { %900 = vmatpush2.bf16.msra.mxu0 %v1082_v32  ;;  %941 = vmatpush2.bf16.msra.mxu1 %v1084_v33 }
  0x7b   :  { %901 = vmatprep.subr.bf16.mxu0 %v1075_v34  ;;  %942 = vmatprep.subr.bf16.mxu1 %v1077_v35 }
  0x7e   :  { %902 = vmatpush2.bf16.msra.mxu0 %v1074_v40  ;;  %943 = vmatpush2.bf16.msra.mxu1 %v1076_v41 }
  0x7f   :  { %903 = vmatprep.subr.bf16.mxu0 %v1067_v57  ;;  %944 = vmatprep.subr.bf16.mxu1 %v1069_v42 }
  0x82   :  { %904 = vmatpush2.bf16.msra.mxu0 %v1066_v47  ;;  %945 = vmatpush2.bf16.msra.mxu1 %v1068_v48 }
  0x83   :  { %905 = vmatprep.subr.bf16.mxu0 %v1059_v49  ;;  %946 = vmatprep.subr.bf16.mxu1 %v1061_v50 }
  0x86   :  { %906 = vmatpush2.bf16.msra.mxu0 %v1058_v55  ;;  %947 = vmatpush2.bf16.msra.mxu1 %v1060_v56 }
  0x87   :  { %907 = vmatprep.subr.bf16.mxu0 %v1051_v58  ;;  %948 = vmatprep.subr.bf16.mxu1 %v1053_v59 }
  0x8a   :  { %908 = vmatpush2.bf16.msra.mxu0 %v1050_v0  ;;  %949 = vmatpush2.bf16.msra.mxu1 %v1052_v1 }
  0x8b   :  { %909 = vmatprep.subr.bf16.mxu0 %v1043_v2  ;;  %950 = vmatprep.subr.bf16.mxu1 %v1045_v3 }
  0x8e   :  { %910 = vmatpush2.bf16.msra.mxu0 %v1042_v4  ;;  %951 = vmatpush2.bf16.msra.mxu1 %v1044_v5 }
  0x91   :  { %912 = vmatmul.mubr.bf16.vlgmr.msra.gmra.mxu0 %v1158_v12  ;;  %953 = vmatmul.mubr.bf16.vlgmr.msra.gmra.mxu1 %v1158_v12 }
 0x111   :  { %v831_v6 = vpop.f32.mrf.mxu0  ;;  %v872_v7 = vpop.f32.mrf.mxu1 }
 0x112   :  { %961 = vst [vmem:[%s1192_s2] sm:$0xff] %v831_v6  ;;  %963 = vst [vmem:[%s1192_s2 + $0x10] sm:$0xff] %v872_v7 }
 0x113   :  { %v833_v8 = vpop.f32.mrf.mxu0  ;;  %v874_v9 = vpop.f32.mrf.mxu1 }
 0x114   :  { %962 = vst [vmem:[%s1192_s2 + $0x8] sm:$0xff] %v833_v8  ;;  %964 = vst [vmem:[%s1192_s2 + $0x18] sm:$0xff] %v874_v9 }
 0x115   :  { %v835_v12 = vpop.f32.mrf.mxu0  ;;  %v876_v10 = vpop.f32.mrf.mxu1 }
 0x117   :  { %v836_v11 = vpop.f32.mrf.mxu0  ;;  %v877_v13 = vpop.f32.mrf.mxu1 }
 0x151   :  { %v913_v14 = vpop.f32.mrf.mxu0  ;;  %v954_v15 = vpop.f32.mrf.mxu1 }
 0x152   :  { %965 = vst [vmem:[%s1192_s2 + $0x20] sm:$0xff] %v913_v14  ;;  %967 = vst [vmem:[%s1192_s2 + $0x30] sm:$0xff] %v954_v15 }
 0x153   :  { %v915_v16 = vpop.f32.mrf.mxu0  ;;  %v956_v17 = vpop.f32.mrf.mxu1 }
 0x154   :  { %966 = vst [vmem:[%s1192_s2 + $0x28] sm:$0xff] %v915_v16  ;;  %968 = vst [vmem:[%s1192_s2 + $0x38] sm:$0xff] %v956_v17 }
 0x155   :  { %v917_v18 = vpop.f32.mrf.mxu0  ;;  %v958_v19 = vpop.f32.mrf.mxu1 }
 0x157   :  { %v918_v20 = vpop.f32.mrf.mxu0  ;;  %v959_v21 = vpop.f32.mrf.mxu1 }
 0x158   :  { %973 = vsyncpa [#allocation3], 1 }

</bundles_post_ra>
